<compile_context>
chip_gen: v7x
topology: tpu7x:2x2x1
jax: 0.10.0
libtpu: 0.0.40
codegen_flags: <defaults>
</compile_context>

<pallas_src>
import jax
import jax.numpy as jnp
from jax.experimental import pallas as pl
from jax.experimental.pallas import tpu as pltpu

# Synthetic sizes consistent with the module:
#   in_features = df.shape[1] - 1  -> pick 64 (keypoint features)
#   hidden sizes fixed by __init__: 128, 64
#   num_classes = len(label_encoder.classes_) -> pick 10
IN_FEATURES = 64
H1 = 128
H2 = 64
H2_PAD = 128          # lane-dense hidden between fc2 and fc3 (one-time zero pad)
C_PAD = 128           # lane-dense logits (no masked vst)
NUM_CLASSES = 10
BATCH = 32            # small demo batch


def _round_up(n, m):
    return pl.cdiv(n, m) * m


def _default_num_batch_tiles():
    """v7x has 2 TensorCores/chip -> keep >=2 parallel batch tiles there.
    v5e/v6e have 1 TC: a single block avoids per-grid-step overhead and fully
    fills v6e's 256-wide MXU M dimension."""
    try:
        kind = jax.devices()[0].device_kind.lower()
    except Exception:
        return 1
    return 2 if "v7" in kind else 1


def prepare_params(w1, b1, w2, b2, w3, b3):
    """One-time parameter prep (hoisted out of the per-call hot path).

    Inputs: (in, out) weights / (1, out) biases in f32 (PyTorch weights
    pre-transposed). Returns bf16 weights / f32 biases with H2 and the class
    dim zero-padded to 128 lanes (zero padding keeps the math exact).
    """
    F = w1.shape[0]
    C = w3.shape[1]
    assert w1.shape == (F, H1) and w2.shape == (H1, H2) and w3.shape == (H2, C)

    w1p = w1.astype(jnp.bfloat16)                                            # (F, 128)
    b1p = b1.astype(jnp.float32).reshape(1, H1)                              # (1, 128)
    w2p = jnp.zeros((H1, H2_PAD), jnp.bfloat16).at[:, :H2].set(w2.astype(jnp.bfloat16))
    b2p = jnp.zeros((1, H2_PAD), jnp.float32).at[:, :H2].set(b2.astype(jnp.float32).reshape(1, H2))
    w3p = jnp.zeros((H2_PAD, C_PAD), jnp.bfloat16).at[:H2, :C].set(w3.astype(jnp.bfloat16))
    b3p = jnp.zeros((1, C_PAD), jnp.float32).at[:, :C].set(b3.astype(jnp.float32).reshape(1, C))
    return dict(w1=w1p, b1=b1p, w2=w2p, b2=b2p, w3=w3p, b3=b3p)


def _mlp_kernel(x_ref, w1_ref, b1_ref, w2_ref, b2_ref, w3_ref, b3_ref, o_ref):
    # fc1 + ReLU: bf16 MXU operands, f32 accumulation; bias/ReLU in f32 (v5e-safe).
    x = x_ref[...].astype(jnp.bfloat16)                       # (tile_b, F)
    h1 = jnp.dot(x, w1_ref[...], preferred_element_type=jnp.float32) + b1_ref[...]
    h1 = jnp.maximum(h1, 0.0)
    # Dropout(p=0.5) at inference is the identity.
    # TODO(synk): training-mode dropout would need pltpu.prng_seed/prng_random_bits.

    # fc2 + ReLU (H2 zero-padded to 128 lanes -> padded h2 columns are exactly 0).
    h2 = jnp.dot(h1.astype(jnp.bfloat16), w2_ref[...],
                 preferred_element_type=jnp.float32) + b2_ref[...]
    h2 = jnp.maximum(h2, 0.0)

    # fc3 logits (no activation) -> lane-dense (tile_b, 128) f32 store.
    o_ref[...] = jnp.dot(h2.astype(jnp.bfloat16), w3_ref[...],
                         preferred_element_type=jnp.float32) + b3_ref[...]


def lingclusive_forward(x, params, num_classes, *, num_batch_tiles=None):
    """x: (B, F) f32. params: output of prepare_params. Returns (B, num_classes) f32 logits."""
    B, F = x.shape
    if num_batch_tiles is None:
        num_batch_tiles = _default_num_batch_tiles()
    num_batch_tiles = max(1, int(num_batch_tiles))

    # Sublane-aligned batch tile (multiple of 16 keeps both f32 and bf16 layouts happy).
    tile_b = _round_up(pl.cdiv(B, num_batch_tiles), 16)
    b_pad = tile_b * num_batch_tiles
    xp = x if b_pad == B else jnp.zeros((b_pad, F), x.dtype).at[:B].set(x)

    # Weights/biases: constant index maps -> fetched once, VMEM-resident across all steps.
    # (pl.Buffered(1) would halve their double-buffer footprint; skipped since the whole
    #  footprint here is < 200 KiB and the grid is usually a single step.)
    const = lambda shape: pl.BlockSpec(shape, lambda i: (0, 0))

    out = pl.pallas_call(
        _mlp_kernel,
        out_shape=jax.ShapeDtypeStruct((b_pad, C_PAD), jnp.float32),
        grid_spec=pl.GridSpec(
            grid=(num_batch_tiles,),
            in_specs=[
                pl.BlockSpec((tile_b, F), lambda i: (i, 0)),   # x streams per batch tile
                const((F, H1)), const((1, H1)),
                const((H1, H2_PAD)), const((1, H2_PAD)),
                const((H2_PAD, C_PAD)), const((1, C_PAD)),
            ],
            out_specs=pl.BlockSpec((tile_b, C_PAD), lambda i: (i, 0)),
        ),
        compiler_params=pltpu.CompilerParams(
            # Batch tiles are independent -> shard across TensorCores on v7x.
            dimension_semantics=("parallel",)),
    )(xp, params["w1"], params["b1"], params["w2"], params["b2"],
      params["w3"], params["b3"])

    return out[:B, :num_classes]


def _reference_f32(x, w1, b1, w2, b2, w3, b3):
    h1 = jnp.maximum(x @ w1 + b1, 0.0)
    h2 = jnp.maximum(h1 @ w2 + b2, 0.0)
    return h2 @ w3 + b3


def _reference_bf16(x, w1, b1, w2, b2, w3, b3):
    bf = jnp.bfloat16
    d = lambda a, b: jnp.dot(a.astype(bf), b.astype(bf), preferred_element_type=jnp.float32)
    h1 = jnp.maximum(d(x, w1) + b1, 0.0)
    h2 = jnp.maximum(d(h1, w2) + b2, 0.0)
    return d(h2, w3) + b3


if __name__ == "__main__":
    key = jax.random.PRNGKey(0)
    kx, k1, k2, k3, kb1, kb2, kb3 = jax.random.split(key, 7)

    x = jax.random.normal(kx, (BATCH, IN_FEATURES), dtype=jnp.float32)

    # Deterministic parameter init (PyTorch-Linear-like uniform bounds).
    def init_w(k, fan_in, fan_out):
        bound = 1.0 / jnp.sqrt(fan_in)
        return jax.random.uniform(k, (fan_in, fan_out), jnp.float32, -bound, bound)

    def init_b(k, fan_in, fan_out):
        bound = 1.0 / jnp.sqrt(fan_in)
        return jax.random.uniform(k, (1, fan_out), jnp.float32, -bound, bound)

    w1 = init_w(k1, IN_FEATURES, H1); b1 = init_b(kb1, IN_FEATURES, H1)
    w2 = init_w(k2, H1, H2);          b2 = init_b(kb2, H1, H2)
    w3 = init_w(k3, H2, NUM_CLASSES); b3 = init_b(kb3, H2, NUM_CLASSES)

    # One-time parameter prep (cast + pad) -- out of the forward hot path.
    params = prepare_params(w1, b1, w2, b2, w3, b3)

    out = lingclusive_forward(x, params, NUM_CLASSES)
    out = jax.block_until_ready(out)
    assert out.shape == (BATCH, NUM_CLASSES)

    # Tight check against a reference using the same bf16 operand casts.
    ref_bf16 = _reference_bf16(x, w1, b1, w2, b2, w3, b3)
    assert jnp.allclose(out, ref_bf16, atol=2e-3, rtol=2e-2), \
        float(jnp.max(jnp.abs(out - ref_bf16)))

    # Loose check against the pure-f32 PyTorch-equivalent forward (bf16 quantization noise).
    ref_f32 = _reference_f32(x, w1, b1, w2, b2, w3, b3)
    assert jnp.allclose(out, ref_f32, atol=5e-2, rtol=5e-2), \
        float(jnp.max(jnp.abs(out - ref_f32)))

    print("KERNEL_OK")
</pallas_src>

<mosaic_0001>
module attributes {stable_mosaic.version = 11 : i64} {
  func.func @_mlp_kernel(%arg0: i32, %arg1: memref<32x64xf32, #tpu.memory_space<vmem>>, %arg2: memref<64x128xbf16, #tpu.memory_space<vmem>>, %arg3: memref<1x128xf32, #tpu.memory_space<vmem>>, %arg4: memref<128x128xbf16, #tpu.memory_space<vmem>>, %arg5: memref<1x128xf32, #tpu.memory_space<vmem>>, %arg6: memref<128x128xbf16, #tpu.memory_space<vmem>>, %arg7: memref<1x128xf32, #tpu.memory_space<vmem>>, %arg8: memref<32x128xf32, #tpu.memory_space<vmem>>) attributes {dimension_semantics = [#tpu.dimension_semantics<parallel>], iteration_bounds = array<i64: 1>, scalar_prefetch = 0 : i64, scratch_operands = 0 : i64, tpu.core_type = #tpu.core_type<tc>, window_params = [{transform_indices = @transform_0, window_bounds = array<i64: 32, 64>}, {pipeline_mode = #tpu.pipeline_mode<synchronous>, transform_indices = @transform_1, window_bounds = array<i64: 64, 128>}, {pipeline_mode = #tpu.pipeline_mode<synchronous>, transform_indices = @transform_2, window_bounds = array<i64: 1, 128>}, {pipeline_mode = #tpu.pipeline_mode<synchronous>, transform_indices = @transform_3, window_bounds = array<i64: 128, 128>}, {pipeline_mode = #tpu.pipeline_mode<synchronous>, transform_indices = @transform_4, window_bounds = array<i64: 1, 128>}, {pipeline_mode = #tpu.pipeline_mode<synchronous>, transform_indices = @transform_5, window_bounds = array<i64: 128, 128>}, {pipeline_mode = #tpu.pipeline_mode<synchronous>, transform_indices = @transform_6, window_bounds = array<i64: 1, 128>}, {transform_indices = @transform_7, window_bounds = array<i64: 32, 128>}]} {
    %c0 = arith.constant 0 : index
    %c0_0 = arith.constant 0 : index
    %0 = vector.load %arg1[%c0, %c0_0] : memref<32x64xf32, #tpu.memory_space<vmem>>, vector<32x64xf32>
    %1 = arith.truncf %0 : vector<32x64xf32> to vector<32x64xbf16>
    %c0_1 = arith.constant 0 : index
    %c0_2 = arith.constant 0 : index
    %2 = vector.load %arg2[%c0_1, %c0_2] : memref<64x128xbf16, #tpu.memory_space<vmem>>, vector<64x128xbf16>
    %cst = arith.constant dense<0.000000e+00> : vector<32x128xf32>
    %3 = tpu.matmul %1, %2, %cst {dimension_numbers = #tpu.dot_dimension_numbers<[1], [0], [0], [1], [0, 0, 1, 1], [], []>} : vector<32x64xbf16>, vector<64x128xbf16>, vector<32x128xf32> -> vector<32x128xf32>
    %c0_3 = arith.constant 0 : index
    %c0_4 = arith.constant 0 : index
    %4 = vector.load %arg3[%c0_3, %c0_4] : memref<1x128xf32, #tpu.memory_space<vmem>>, vector<1x128xf32>
    %5 = vector.broadcast %4 : vector<1x128xf32> to vector<32x128xf32>
    %6 = arith.addf %3, %5 : vector<32x128xf32>
    %cst_5 = arith.constant 0.000000e+00 : f32
    %7 = vector.broadcast %cst_5 : f32 to vector<32x128xf32>
    %8 = arith.maximumf %6, %7 : vector<32x128xf32>
    %9 = arith.truncf %8 : vector<32x128xf32> to vector<32x128xbf16>
    %c0_6 = arith.constant 0 : index
    %c0_7 = arith.constant 0 : index
    %10 = vector.load %arg4[%c0_6, %c0_7] : memref<128x128xbf16, #tpu.memory_space<vmem>>, vector<128x128xbf16>
    %cst_8 = arith.constant dense<0.000000e+00> : vector<32x128xf32>
    %11 = tpu.matmul %9, %10, %cst_8 {dimension_numbers = #tpu.dot_dimension_numbers<[1], [0], [0], [1], [0, 0, 1, 1], [], []>} : vector<32x128xbf16>, vector<128x128xbf16>, vector<32x128xf32> -> vector<32x128xf32>
    %c0_9 = arith.constant 0 : index
    %c0_10 = arith.constant 0 : index
    %12 = vector.load %arg5[%c0_9, %c0_10] : memref<1x128xf32, #tpu.memory_space<vmem>>, vector<1x128xf32>
    %13 = vector.broadcast %12 : vector<1x128xf32> to vector<32x128xf32>
    %14 = arith.addf %11, %13 : vector<32x128xf32>
    %cst_11 = arith.constant 0.000000e+00 : f32
    %15 = vector.broadcast %cst_11 : f32 to vector<32x128xf32>
    %16 = arith.maximumf %14, %15 : vector<32x128xf32>
    %17 = arith.truncf %16 : vector<32x128xf32> to vector<32x128xbf16>
    %c0_12 = arith.constant 0 : index
    %c0_13 = arith.constant 0 : index
    %18 = vector.load %arg6[%c0_12, %c0_13] : memref<128x128xbf16, #tpu.memory_space<vmem>>, vector<128x128xbf16>
    %cst_14 = arith.constant dense<0.000000e+00> : vector<32x128xf32>
    %19 = tpu.matmul %17, %18, %cst_14 {dimension_numbers = #tpu.dot_dimension_numbers<[1], [0], [0], [1], [0, 0, 1, 1], [], []>} : vector<32x128xbf16>, vector<128x128xbf16>, vector<32x128xf32> -> vector<32x128xf32>
    %c0_15 = arith.constant 0 : index
    %c0_16 = arith.constant 0 : index
    %20 = vector.load %arg7[%c0_15, %c0_16] : memref<1x128xf32, #tpu.memory_space<vmem>>, vector<1x128xf32>
    %21 = vector.broadcast %20 : vector<1x128xf32> to vector<32x128xf32>
    %22 = arith.addf %19, %21 : vector<32x128xf32>
    %c0_17 = arith.constant 0 : index
    %c0_18 = arith.constant 0 : index
    %23 = vector.load %arg8[%c0_17, %c0_18] : memref<32x128xf32, #tpu.memory_space<vmem>>, vector<32x128xf32>
    tpu.vector_store %arg8[%c0_17, %c0_18], %22 {strides = array<i32>} : memref<32x128xf32, #tpu.memory_space<vmem>>, vector<32x128xf32>,
    return
  }
  func.func @transform_0(%arg0: i32) -> (i32, i32) {
    %c0_i32 = arith.constant 0 : i32
    %c0_i32_0 = arith.constant 0 : i32
    return %arg0, %c0_i32 : i32, i32
  }
  func.func @transform_1(%arg0: i32) -> (i32, i32) {
    %c0_i32 = arith.constant 0 : i32
    %c0_i32_0 = arith.constant 0 : i32
    %c0_i32_1 = arith.constant 0 : i32
    return %c0_i32, %c0_i32_0 : i32, i32
  }
  func.func @transform_2(%arg0: i32) -> (i32, i32) {
    %c0_i32 = arith.constant 0 : i32
    %c0_i32_0 = arith.constant 0 : i32
    %c0_i32_1 = arith.constant 0 : i32
    return %c0_i32, %c0_i32_0 : i32, i32
  }
  func.func @transform_3(%arg0: i32) -> (i32, i32) {
    %c0_i32 = arith.constant 0 : i32
    %c0_i32_0 = arith.constant 0 : i32
    %c0_i32_1 = arith.constant 0 : i32
    return %c0_i32, %c0_i32_0 : i32, i32
  }
  func.func @transform_4(%arg0: i32) -> (i32, i32) {
    %c0_i32 = arith.constant 0 : i32
    %c0_i32_0 = arith.constant 0 : i32
    %c0_i32_1 = arith.constant 0 : i32
    return %c0_i32, %c0_i32_0 : i32, i32
  }
  func.func @transform_5(%arg0: i32) -> (i32, i32) {
    %c0_i32 = arith.constant 0 : i32
    %c0_i32_0 = arith.constant 0 : i32
    %c0_i32_1 = arith.constant 0 : i32
    return %c0_i32, %c0_i32_0 : i32, i32
  }
  func.func @transform_6(%arg0: i32) -> (i32, i32) {
    %c0_i32 = arith.constant 0 : i32
    %c0_i32_0 = arith.constant 0 : i32
    %c0_i32_1 = arith.constant 0 : i32
    return %c0_i32, %c0_i32_0 : i32, i32
  }
  func.func @transform_7(%arg0: i32) -> (i32, i32) {
    %c0_i32 = arith.constant 0 : i32
    %c0_i32_0 = arith.constant 0 : i32
    return %arg0, %c0_i32 : i32, i32
  }
}

</mosaic_0001>

<bundles_post_ra>
// kernel: tpu_custom_call.1
= control target key start
LH: loop header
LB: loop body
LE: loop exit
PB: predicated region body
PF: predicated region fallthrough
CT: control target
= control target key end

     0   :  { %12 = vsyncpa [#allocation3], 0  ;;  %s851_s0 = inlined_call_operand.hbm [shape: f32[32,64], index: 0, kind: input, shape index: {}]   ;;  %s852_s1 = inlined_call_operand.hbm [shape: bf16[64,128], index: 1, kind: input, shape index: {}]   ;;  %s853_s2 = inlined_call_operand.vmem [shape: f32[1,128], index: 2, kind: input, shape index: {}]   ;;  %s854_s3 = inlined_call_operand.hbm [shape: bf16[128,128], index: 3, kind: input, shape index: {}]   ;;  %s855_s4 = inlined_call_operand.vmem [shape: f32[1,128], index: 4, kind: input, shape index: {}]   ;;  %s856_s5 = inlined_call_operand.hbm [shape: bf16[128,128], index: 5, kind: input, shape index: {}]   ;;  %s857_s6 = inlined_call_operand.vmem [shape: f32[1,128], index: 6, kind: input, shape index: {}]   ;;  %s858_s7 = inlined_call_operand.hbm [shape: f32[32,128], index: 7, kind: output, shape index: {}]  }
   0x1   :  { %13 = vsyncpa [#allocation6], 0 }
   0x2   :  { %14 = vsyncpa [#allocation9], 0 }
   0x3   :  { %15 = vsyncpa [#allocation4], 0  ;;  %s709_s24 = smov [#allocation5]   ;;  %s591_s28 = scalar_lea.hbm %s852_s1, 512 }
   0x4   :  { %s33_s25 = sshll.u32 %s709_s24, 4  ;;  %p592_p0 = scmp.ne.s32.totalorder %s852_s1, %s591_s28  ;;  %s34_s25 = int_to_ptr.vmem [resolvable:$true] %s33_s25 }
   0x5   :  { %p595_p1 = scmp.lt.u32.totalorder %s591_s28, %s852_s1 }
   0x7   :  { %p597_p2 = pnand %p595_p1, %p592_p0 }
   0x9   :  { %600 = shalt.err (!%p597_p2)
}
   0xa   :  { %s601_s10 = scalar_lea.vmem %s34_s25, 512  ;;  %p606_p4 = scmp.lt.s32.totalorder %s34_s25, %s34_s25 }
   0xb   :  { %p602_p3 = scmp.ne.s32.totalorder %s34_s25, %s601_s10  ;;  %p607_p5 = scmp.lt.s32.totalorder %s601_s10, %s601_s10 }
   0xd   :  { %p608_p6 = por %p607_p5, %p606_p4 }
   0xf   :  { %p609_p7 = pnand %p608_p6, %p602_p3 }
  0x11   :  { %612 = shalt.err (!%p609_p7)
}
  0x12   :  { %s710_s11 = smov 64   ;;  %s711_s12 = smov 4  }
  0x13   :  { %39 = dma.hbm_to_vmem [thread:$0]  %s852_s1, 512, %s34_s25, [#allocation6], %s710_s11, %s710_s11, %s711_s12  }
  0x14   :  { %s712_s15 = smov [#allocation2]   ;;  %s613_s19 = scalar_lea.hbm %s851_s0, 512 }
  0x15   :  { %s21_s16 = sshll.u32 %s712_s15, 4  ;;  %p614_p8 = scmp.ne.s32.totalorder %s851_s0, %s613_s19  ;;  %s22_s16 = int_to_ptr.vmem [resolvable:$true] %s21_s16 }
  0x16   :  { %p617_p9 = scmp.lt.u32.totalorder %s613_s19, %s851_s0 }
  0x18   :  { %p619_p10 = pnand %p617_p9, %p614_p8 }
  0x1a   :  { %622 = shalt.err (!%p619_p10)
}
  0x1b   :  { %s623_s24 = scalar_lea.vmem %s22_s16, 512  ;;  %p628_p12 = scmp.lt.s32.totalorder %s22_s16, %s22_s16 }
  0x1c   :  { %p624_p11 = scmp.ne.s32.totalorder %s22_s16, %s623_s24  ;;  %p629_p13 = scmp.lt.s32.totalorder %s623_s24, %s623_s24 }
  0x1e   :  { %p630_p0 = por %p629_p13, %p628_p12 }
  0x20   :  { %p631_p1 = pnand %p630_p0, %p624_p11 }
  0x22   :  { %634 = shalt.err (!%p631_p1)
}
  0x23   :  { %s713_s1 = smov 128   ;;  %s714_s25 = smov 8  }
  0x24   :  { %27 = dma.hbm_to_vmem [thread:$0]  %s851_s0, 512, %s22_s16, [#allocation3], %s713_s1, %s713_s1, %s714_s25  }
  0x25   :  { %s715_s28 = smov [#allocation7]   ;;  %s716_s30 = smov [#allocation8]  }
  0x26   :  { %s47_s29 = sshll.u32 %s715_s28, 4  ;;  %s61_s8 = sshll.u32 %s716_s30, 4  ;;  %s48_s29 = int_to_ptr.vmem [resolvable:$true] %s47_s29  ;;  %s788_s8 = int_to_ptr.vmem [resolvable:$true] %s61_s8 }
  0x27   :  { %s635_s13 = scalar_lea.hbm %s854_s3, 1024 }
  0x28   :  { %p636_p2 = scmp.ne.s32.totalorder %s854_s3, %s635_s13  ;;  %p639_p3 = scmp.lt.u32.totalorder %s635_s13, %s854_s3 }
  0x2a   :  { %p641_p4 = pnand %p639_p3, %p636_p2 }
  0x2c   :  { %644 = shalt.err (!%p641_p4)
}
  0x2d   :  { %s645_s0 = scalar_lea.vmem %s48_s29, 1024  ;;  %p650_p6 = scmp.lt.s32.totalorder %s48_s29, %s48_s29 }
  0x2e   :  { %p646_p5 = scmp.ne.s32.totalorder %s48_s29, %s645_s0  ;;  %p651_p7 = scmp.lt.s32.totalorder %s645_s0, %s645_s0 }
  0x30   :  { %p652_p8 = por %p651_p7, %p650_p6 }
  0x32   :  { %p653_p9 = pnand %p652_p8, %p646_p5 }
  0x34   :  { %656 = shalt.err (!%p653_p9)
}
  0x35   :  { %53 = dma.hbm_to_vmem [thread:$0]  %s854_s3, 1024, %s48_s29, [#allocation6], %s710_s11, %s710_s11, %s711_s12  }
  0x36   :  { %s657_s22 = scalar_lea.hbm %s856_s5, 1024 }
  0x37   :  { %p658_p10 = scmp.ne.s32.totalorder %s856_s5, %s657_s22  ;;  %p661_p11 = scmp.lt.u32.totalorder %s657_s22, %s856_s5 }
  0x39   :  { %p663_p12 = pnand %p661_p11, %p658_p10 }
  0x3b   :  { %666 = shalt.err (!%p663_p12)
}
  0x3c   :  { %s667_s28 = scalar_lea.vmem %s788_s8, 1024  ;;  %p672_p0 = scmp.lt.s32.totalorder %s788_s8, %s788_s8 }
  0x3d   :  { %p668_p13 = scmp.ne.s32.totalorder %s788_s8, %s667_s28  ;;  %p673_p1 = scmp.lt.s32.totalorder %s667_s28, %s667_s28 }
  0x3f   :  { %p674_p2 = por %p673_p1, %p672_p0 }
  0x41   :  { %p675_p3 = pnand %p674_p2, %p668_p13 }
  0x43   :  { %678 = shalt.err (!%p675_p3)
}
  0x44   :  { %67 = dma.hbm_to_vmem [thread:$0]  %s856_s5, 1024, %s788_s8, [#allocation9], %s710_s11, %s710_s11, %s711_s12  }
  0x45   :  { %701 = dma.done.wait [#allocation3], 512  }
  0x46   :  { %702 = vsyncadd [#allocation3], 4294966784 }
  0x47   :  { %703 = dma.done.wait [#allocation6], 1536  }
  0x48   :  { %704 = vsyncadd [#allocation6], 4294965760 }
  0x49   :  { %705 = dma.done.wait [#allocation9], 1024  }
  0x4a   :  { %706 = vsyncadd [#allocation9], 4294966272  ;;  %v571_v0 = vld [vmem:[#allocation5] sm:$0xff]   ;;  %v572_v1 = vld [vmem:[#allocation5 + $0x8] sm:$0xff]   ;;  %vm128_vm0 = vcmask 523264  }
  0x4b   :  { %510 = vmatprep.subr.bf16.mxu0 %v571_v0  ;;  %v573_v2 = vld [vmem:[#allocation5 + $0x10] sm:$0xff]   ;;  %v83_v3 = vld [vmem:[#allocation2] sm:$0xff]  ;;  %v84_v4 = vld [vmem:[#allocation2 + $0x8] sm:$0xff] }
  0x4c   :  { %511 = vmatpush3.bf16.msra.mxu0 %v571_v0  ;;  %v87_v5 = vpack.c.bf16 %v84_v4, %v83_v3  ;;  %v575_v6 = vld [vmem:[#allocation7] sm:$0xff]   ;;  %v576_v7 = vld [vmem:[#allocation7 + $0x8] sm:$0xff]   ;;  %v574_v8 = vld [vmem:[#allocation5 + $0x18] sm:$0xff]  }
  0x4d   :  { %512 = vmatprep.subr.bf16.mxu0 %v572_v1  ;;  %522 = vmatprep.subr.bf16.mxu1 %v575_v6  ;;  %v85_v9 = vld [vmem:[#allocation2 + $0x10] sm:$0xff]  ;;  %v86_v11 = vld [vmem:[#allocation2 + $0x18] sm:$0xff]  ;;  %v579_v14 = vld [vmem:[#allocation7 + $0x20] sm:$0xff]  }
  0x4e   :  { %518 = vmatprep.mubr.msk.bf16.mxu0 %vm128_vm0, %v87_v5  ;;  %523 = vmatpush3.bf16.msra.mxu1 %v575_v6  ;;  %v577_v10 = vld [vmem:[#allocation7 + $0x10] sm:$0xff]   ;;  %v578_v12 = vld [vmem:[#allocation7 + $0x18] sm:$0xff]   ;;  %v88_v13 = vpack.c.bf16 %v86_v11, %v85_v9  ;;  %v580_v15 = vld [vmem:[#allocation7 + $0x28] sm:$0xff]  }
  0x4f   :  { %524 = vmatprep.subr.bf16.mxu1 %v576_v7  ;;  %v581_v16 = vld [vmem:[#allocation7 + $0x30] sm:$0xff]   ;;  %v582_v17 = vld [vmem:[#allocation7 + $0x38] sm:$0xff]   ;;  %v583_v18 = vld [vmem:[#allocation8] sm:$0xff]  }
  0x50   :  { %513 = vmatpush3.bf16.msra.mxu0 %v572_v1  ;;  %v584_v19 = vld [vmem:[#allocation8 + $0x8] sm:$0xff]   ;;  %v585_v20 = vld [vmem:[#allocation8 + $0x10] sm:$0xff]   ;;  %v586_v21 = vld [vmem:[#allocation8 + $0x18] sm:$0xff]  }
  0x51   :  { %514 = vmatprep.subr.bf16.mxu0 %v573_v2  ;;  %v587_v22 = vld [vmem:[#allocation8 + $0x20] sm:$0xff]   ;;  %v588_v23 = vld [vmem:[#allocation8 + $0x28] sm:$0xff]   ;;  %v589_v39 = vld [vmem:[#allocation8 + $0x30] sm:$0xff]  }
  0x52   :  { %525 = vmatpush3.bf16.msra.mxu1 %v576_v7  ;;  %v459_v24 = vld [vmem:[%s853_s2] ss:$0 sm:$0xff]  ;;  %v590_v40 = vld [vmem:[#allocation8 + $0x38] sm:$0xff]  }
  0x53   :  { %526 = vmatprep.subr.bf16.mxu1 %v577_v10  ;;  %v466_v41 = vld [vmem:[%s855_s4] ss:$0 sm:$0xff]  ;;  %s717_s4 = smov [#allocation10]  }
  0x54   :  { %515 = vmatpush3.bf16.msra.mxu0 %v573_v2  ;;  %v475_v56 = vld [vmem:[%s857_s6] ss:$0 sm:$0xff]  ;;  %s445_s9 = sshll.u32 %s717_s4, 4  ;;  %s446_s9 = int_to_ptr.vmem [resolvable:$true] %s445_s9 }
  0x55   :  { %516 = vmatprep.subr.bf16.mxu0 %v574_v8  ;;  %s679_s10 = scalar_lea.vmem %s446_s9, 512  ;;  %p684_p5 = scmp.lt.s32.totalorder %s446_s9, %s446_s9 }
  0x56   :  { %527 = vmatpush3.bf16.msra.mxu1 %v577_v10  ;;  %p680_p4 = scmp.ne.s32.totalorder %s446_s9, %s679_s10  ;;  %p685_p6 = scmp.lt.s32.totalorder %s679_s10, %s679_s10 }
  0x57   :  { %528 = vmatprep.subr.bf16.mxu1 %v578_v12 }
  0x58   :  { %517 = vmatpush3.bf16.msra.mxu0 %v574_v8  ;;  %p686_p7 = por %p685_p6, %p684_p5 }
  0x59   :  { %542 = vmatprep.subr.bf16.mxu0 %v583_v18 }
  0x5a   :  { %529 = vmatpush3.bf16.msra.mxu1 %v578_v12  ;;  %p687_p8 = pnand %p686_p7, %p680_p4 }
  0x5b   :  { %519 = vmatmul.mubr.msk.bf16.vlgmr.msra.gmra.mrb[0].mxu0 %vm128_vm0, %v88_v13  ;;  %530 = vmatprep.subr.bf16.mxu1 %v579_v14 }
  0x5c   :  { %543 = vmatpush3.bf16.msra.mxu0 %v583_v18 }
  0x5d   :  { %544 = vmatprep.subr.bf16.mxu0 %v584_v19 }
  0x5e   :  { %531 = vmatpush3.bf16.msra.mxu1 %v579_v14 }
  0x5f   :  { %532 = vmatprep.subr.bf16.mxu1 %v580_v15 }
  0x60   :  { %545 = vmatpush3.bf16.msra.mxu0 %v584_v19 }
  0x61   :  { %546 = vmatprep.subr.bf16.mxu0 %v585_v20 }
  0x62   :  { %533 = vmatpush3.bf16.msra.mxu1 %v580_v15 }
  0x63   :  { %534 = vmatprep.subr.bf16.mxu1 %v581_v16 }
  0x64   :  { %547 = vmatpush3.bf16.msra.mxu0 %v585_v20 }
  0x65   :  { %548 = vmatprep.subr.bf16.mxu0 %v586_v21 }
  0x66   :  { %535 = vmatpush3.bf16.msra.mxu1 %v581_v16 }
  0x67   :  { %536 = vmatprep.subr.bf16.mxu1 %v582_v17 }
  0x68   :  { %549 = vmatpush3.bf16.msra.mxu0 %v586_v21 }
  0x69   :  { %550 = vmatprep.subr.bf16.mxu0 %v587_v22 }
  0x6a   :  { %537 = vmatpush3.bf16.msra.mxu1 %v582_v17 }
  0x6c   :  { %551 = vmatpush3.bf16.msra.mxu0 %v587_v22 }
  0x6d   :  { %552 = vmatprep.subr.bf16.mxu0 %v588_v23 }
  0x70   :  { %553 = vmatpush3.bf16.msra.mxu0 %v588_v23 }
  0x71   :  { %554 = vmatprep.subr.bf16.mxu0 %v589_v39 }
  0x74   :  { %555 = vmatpush3.bf16.msra.mxu0 %v589_v39 }
  0x75   :  { %556 = vmatprep.subr.bf16.mxu0 %v590_v40 }
  0x78   :  { %557 = vmatpush3.bf16.msra.mxu0 %v590_v40 }
 0x12e   :  { %v520_v25 = vpop.f32.mrb[0].mxu0 }
 0x12f   :  { %v178_v26 = vadd.f32 %v520_v25, %v459_v24  ;;  %v169_v27 = vpop.f32.mrb[1].mxu0 }
 0x130   :  { %v170_v28 = vadd.f32 %v459_v24, %v169_v27  ;;  %v521_v29 = vpop.f32.mrb[2].mxu0 }
 0x131   :  { %v181_v30 = vadd.f32 %v521_v29, %v459_v24  ;;  %v172_v31 = vpop.f32.mrb[3].mxu0  ;;  %v186_v33 = vmax.f32 %v178_v26, 0.0 }
 0x132   :  { %v173_v32 = vadd.f32 %v459_v24, %v172_v31  ;;  %v184_v35 = vmax.f32 %v170_v28, 0.0 }
 0x133   :  { %v187_v34 = vmax.f32 %v181_v30, 0.0 }
 0x134   :  { %v185_v36 = vmax.f32 %v173_v32, 0.0 }
 0x135   :  { %v189_v37 = vpack.c.bf16 %v187_v34, %v186_v33 }
 0x136   :  { %v188_v38 = vpack.c.bf16 %v185_v36, %v184_v35 }
 0x138   :  { %538 = vmatprep.mubr.bf16.mxu1 %v188_v38 }
 0x139   :  { %539 = vmatmul.mubr.bf16.vlgmr.msra.gmra.mrb[0].mxu1 %v189_v37 }
 0x20c   :  { %v540_v42 = vpop.f32.mrb[0].mxu1 }
 0x20d   :  { %v304_v43 = vadd.f32 %v540_v42, %v466_v41  ;;  %v295_v44 = vpop.f32.mrb[1].mxu1 }
 0x20e   :  { %v296_v45 = vadd.f32 %v466_v41, %v295_v44  ;;  %v541_v46 = vpop.f32.mrb[2].mxu1 }
 0x20f   :  { %v307_v47 = vadd.f32 %v541_v46, %v466_v41  ;;  %v298_v48 = vpop.f32.mrb[3].mxu1  ;;  %v312_v50 = vmax.f32 %v304_v43, 0.0 }
 0x210   :  { %v299_v49 = vadd.f32 %v466_v41, %v298_v48  ;;  %v310_v52 = vmax.f32 %v296_v45, 0.0 }
 0x211   :  { %v313_v51 = vmax.f32 %v307_v47, 0.0 }
 0x212   :  { %v311_v53 = vmax.f32 %v299_v49, 0.0 }
 0x213   :  { %v315_v54 = vpack.c.bf16 %v313_v51, %v312_v50 }
 0x214   :  { %v314_v55 = vpack.c.bf16 %v311_v53, %v310_v52 }
 0x216   :  { %558 = vmatprep.mubr.bf16.mxu0 %v314_v55 }
 0x217   :  { %559 = vmatmul.mubr.bf16.vlgmr.msra.gmra.mrb[4].mxu0 %v315_v54 }
 0x2ea   :  { %v560_v57 = vpop.f32.mrb[4].mxu0 }
 0x2eb   :  { %v430_v58 = vadd.f32 %v560_v57, %v475_v56  ;;  %v421_v59 = vpop.f32.mrb[5].mxu0 }
 0x2ec   :  { %v422_v60 = vadd.f32 %v475_v56, %v421_v59  ;;  %v561_v61 = vpop.f32.mrb[6].mxu0 }
 0x2ed   :  { %438 = vst [vmem:[#allocation10 + $0x10] sm:$0xff] %v430_v58  ;;  %v433_v62 = vadd.f32 %v561_v61, %v475_v56  ;;  %v424_v63 = vpop.f32.mrb[7].mxu0 }
 0x2ee   :  { %436 = vst [vmem:[#allocation10] sm:$0xff] %v422_v60  ;;  %v425_v0 = vadd.f32 %v475_v56, %v424_v63 }
 0x2ef   :  { %439 = vst [vmem:[#allocation10 + $0x18] sm:$0xff] %v433_v62 }
 0x2f0   :  { %437 = vst [vmem:[#allocation10 + $0x8] sm:$0xff] %v425_v0 }
 0x2f1   :  { %690 = shalt.err (!%p687_p8)
}
 0x2f2   :  { %s691_s14 = scalar_lea.hbm %s858_s7, 512 }
 0x2f3   :  { %p692_p9 = scmp.ne.s32.totalorder %s858_s7, %s691_s14  ;;  %p695_p10 = scmp.lt.u32.totalorder %s691_s14, %s858_s7 }
 0x2f5   :  { %p697_p11 = pnand %p695_p10, %p692_p9 }
 0x2f7   :  { %700 = shalt.err (!%p697_p11)
}
 0x2f8   :  { %451 = dma.vmem_to_hbm [thread:$0]  %s446_s9, 512, %s858_s7, [#allocation4], %s713_s1, %s713_s1, %s714_s25  }
 0x2f9   :  { %707 = dma.done.wait [#allocation4], 512  }
 0x2fa   :  { %708 = vsyncadd [#allocation4], 4294966784 }
 0x2fb   :  { %455 = vsyncpa [#allocation3], 1 }
 0x2fc   :  { %456 = vsyncpa [#allocation6], 1 }
 0x2fd   :  { %457 = vsyncpa [#allocation9], 1 }
 0x2fe   :  { %458 = vsyncpa [#allocation4], 1 }

</bundles_post_ra>
